<compile_context>
chip_gen: v5e
topology: v5e:2x2
jax: 0.10.0
libtpu: 0.0.40
codegen_flags: <defaults>
</compile_context>

<pallas_src>
import jax
import jax.numpy as jnp
from jax.experimental import pallas as pl
from jax.experimental.pallas import tpu as pltpu


_ROW_ALIGN = 16              # row granularity covering f32 (8) and bf16 (16) sublanes
_STEP_FLOOR_BYTES = 512 << 10   # keep per-grid-step DMA >= 512 KiB
_MAX_ROW_BYTES = 512 << 10      # beyond this a single row would need lane tiling


def _round_up(x, m):
    return (x + m - 1) // m * m


def _round_down(x, m):
    return (x // m) * m


def _ceil_div(a, b):
    return (a + b - 1) // b


def _target_tile_bytes():
    """Per-buffer tile-size target; bigger on v7x to amortize grid-step overhead."""
    try:
        kind = jax.devices()[0].device_kind.lower()
    except Exception:
        kind = ""
    if "v7" in kind or "7x" in kind:
        return 4 << 20
    return 2 << 20


def _output_layer_kernel(w_ref, x_ref, o_ref):
    # w_ref: (1,) f32 conv weight, scalar-prefetched into SMEM.
    # x_ref / o_ref: (tile_rows, lane) tiles in VMEM.
    # Multiply in f32 (matches PyTorch keeping the conv weight in fp32); cast
    # back after the clamp. Extra VPU work is free under the HBM bound.
    y = x_ref[...].astype(jnp.float32) * w_ref[0]
    o_ref[...] = jnp.clip(y, 0.0, 1.0).astype(o_ref.dtype)


def output_layer(x, weight, *, min_pallas_elems=1 << 20, force_pallas=False,
                 donate_input=False):
    """x: (N, 1, H, W) float; weight: (1, 1, 1, 1) (Conv2d 1x1 kernel, no bias)."""
    n, c, h, w = x.shape
    assert c == 1, "outputLayer expects a single input channel"
    dtype = x.dtype
    itemsize = x.dtype.itemsize
    total = x.size
    w_scalar = weight.reshape(()).astype(jnp.float32)

    def xla_fallback():
        return jnp.clip(x.astype(jnp.float32) * w_scalar, 0.0, 1.0).astype(dtype)

    if total < min_pallas_elems and not force_pallas:
        # Tiny inputs: pallas_call launch + DMA setup dwarfs the work.
        return xla_fallback()

    # --- Zero-copy 2D view (no pad / slice HBM passes around the kernel) ----
    lane = None
    if total % 128 == 0:
        for cand in (512, 256, 128):
            if total % cand == 0:
                lane = cand
                break
    if lane is not None:
        rows, cols = total // lane, lane          # lane-dense, unmasked stores
    else:
        rows, cols = n * c * h, w                 # natural contiguous view

    row_bytes = cols * itemsize
    if row_bytes > _MAX_ROW_BYTES:
        # TODO(synk): pathologically wide non-divisible rows would also need
        # lane tiling inside the kernel; fall back to the fused XLA op instead.
        return xla_fallback()

    # --- Tile sizing: by bytes, generation-aware, grid shaped for 2 TCs -----
    tile_bytes = _target_tile_bytes()
    rows_from_bytes = max(_ROW_ALIGN, _round_down(tile_bytes // row_bytes, _ROW_ALIGN))
    rows_for_8_steps = _round_up(_ceil_div(rows, 8), _ROW_ALIGN)
    rows_floor = _round_up(max(1, _ceil_div(_STEP_FLOOR_BYTES, row_bytes)), _ROW_ALIGN)
    tile_rows = min(rows_from_bytes, max(rows_for_8_steps, rows_floor))
    if tile_rows >= rows:
        tile_rows = rows                          # single full-extent block is legal
    grid = (_ceil_div(rows, tile_rows),)

    # 4 live buffers (in + out, double-buffered). Raise the scoped VMEM limit
    # only when big (v7x-sized) tiles get close to the smallest default (16 MiB).
    vmem_needed = 4 * tile_rows * _round_up(cols, 128) * itemsize
    vmem_limit = None
    if vmem_needed > (12 << 20):
        vmem_limit = int(min(48 << 20, vmem_needed + (8 << 20)))

    x2d = x.reshape(rows, cols)                   # contiguous row-major -> free reshape
    w_smem = weight.reshape(1).astype(jnp.float32)

    extra_kwargs = {}
    if donate_input:
        # weight is call-arg 0 (scalar prefetch); x2d is call-arg 1.
        extra_kwargs["input_output_aliases"] = {1: 0}

    out2d = pl.pallas_call(
        _output_layer_kernel,
        out_shape=jax.ShapeDtypeStruct((rows, cols), dtype),
        grid_spec=pltpu.PrefetchScalarGridSpec(
            num_scalar_prefetch=1,
            grid=grid,
            in_specs=[pl.BlockSpec((tile_rows, cols), lambda i, wref: (i, 0))],
            out_specs=pl.BlockSpec((tile_rows, cols), lambda i, wref: (i, 0)),
        ),
        compiler_params=pltpu.CompilerParams(
            # Independent elementwise tiles -> shard across v7x's 2 TensorCores.
            dimension_semantics=("parallel",),
            vmem_limit_bytes=vmem_limit,
        ),
        **extra_kwargs,
    )(w_smem, x2d)

    return out2d.reshape(n, c, h, w)


if __name__ == "__main__":
    key = jax.random.PRNGKey(0)
    k_x, k_w, k_x2, k_x3 = jax.random.split(key, 4)

    # Deterministic Conv2d weight of shape (out_c=1, in_c=1, kH=1, kW=1).
    weight = jax.random.uniform(
        k_w, (1, 1, 1, 1), dtype=jnp.float32, minval=-1.0, maxval=1.0
    )

    def ref_fn(xx):
        return jnp.clip(xx * weight.reshape(()), 0.0, 1.0)

    # 1) Small shape consistent with the module (N=2, C=1, H=16, W=16), forced
    #    through the Pallas path (single-block lane-dense view).
    x_small = jax.random.normal(k_x, (2, 1, 16, 16), dtype=jnp.float32)
    out_small = output_layer(x_small, weight, force_pallas=True)
    jax.block_until_ready(out_small)
    assert out_small.shape == x_small.shape
    assert jnp.allclose(out_small, ref_fn(x_small), atol=1e-6), "small mismatch"

    # 2) Lane-dense divisible shape -> multi-step pipelined grid (lane=512).
    x_mid = jax.random.normal(k_x2, (2, 1, 512, 512), dtype=jnp.float32)
    out_mid = output_layer(x_mid, weight, force_pallas=True)
    jax.block_until_ready(out_mid)
    assert jnp.allclose(out_mid, ref_fn(x_mid), atol=1e-6), "mid mismatch"

    # 3) Non-divisible shape -> natural (N*H, W) view with a ragged final row
    #    block and no pad/slice passes; also exercises input_output_aliases.
    x_big = jax.random.normal(k_x3, (3, 1, 500, 500), dtype=jnp.float32)
    out_big = output_layer(x_big, weight, force_pallas=True, donate_input=True)
    jax.block_until_ready(out_big)
    assert out_big.shape == x_big.shape
    assert jnp.allclose(out_big, ref_fn(x_big), atol=1e-6), "big mismatch"

    # 4) Tiny-input fallback (fused XLA path) also matches the reference.
    out_fb = output_layer(x_small, weight)
    jax.block_until_ready(out_fb)
    assert jnp.allclose(out_fb, ref_fn(x_small), atol=1e-6), "fallback mismatch"

    print("KERNEL_OK")
</pallas_src>

<mosaic_0001>
module attributes {stable_mosaic.version = 11 : i64} {
  func.func @_output_layer_kernel(%arg0: i32, %arg1: memref<1xf32, #tpu.memory_space<smem>>, %arg2: memref<1x512xf32, #tpu.memory_space<vmem>>, %arg3: memref<1x512xf32, #tpu.memory_space<vmem>>) attributes {dimension_semantics = [#tpu.dimension_semantics<parallel>], iteration_bounds = array<i64: 1>, scalar_prefetch = 1 : i64, scratch_operands = 0 : i64, tpu.core_type = #tpu.core_type<tc>, window_params = [{transform_indices = @transform_0, window_bounds = array<i64: 1, 512>}, {transform_indices = @transform_1, window_bounds = array<i64: 1, 512>}]} {
    %c0 = arith.constant 0 : index
    %c0_0 = arith.constant 0 : index
    %0 = vector.load %arg2[%c0, %c0_0] : memref<1x512xf32, #tpu.memory_space<vmem>>, vector<1x512xf32>
    %c0_1 = arith.constant 0 : index
    %1 = memref.load %arg1[%c0_1] : memref<1xf32, #tpu.memory_space<smem>>
    %2 = vector.broadcast %1 : f32 to vector<1x512xf32>
    %3 = arith.mulf %0, %2 : vector<1x512xf32>
    %cst = arith.constant 0.000000e+00 : f32
    %cst_2 = arith.constant 1.000000e+00 : f32
    %4 = vector.broadcast %cst : f32 to vector<1x512xf32>
    %5 = arith.maximumf %4, %3 : vector<1x512xf32>
    %6 = vector.broadcast %cst_2 : f32 to vector<1x512xf32>
    %7 = arith.minimumf %6, %5 : vector<1x512xf32>
    %c0_3 = arith.constant 0 : index
    %c0_4 = arith.constant 0 : index
    %8 = vector.load %arg3[%c0_3, %c0_4] : memref<1x512xf32, #tpu.memory_space<vmem>>, vector<1x512xf32>
    tpu.vector_store %arg3[%c0_3, %c0_4], %7 {strides = array<i32>} : memref<1x512xf32, #tpu.memory_space<vmem>>, vector<1x512xf32>,
    return
  }
  func.func @transform_0(%arg0: i32, %arg1: memref<1xf32, #tpu.memory_space<smem>>) -> (i32, i32) {
    %c0_i32 = arith.constant 0 : i32
    %c0_i32_0 = arith.constant 0 : i32
    return %arg0, %c0_i32 : i32, i32
  }
  func.func @transform_1(%arg0: i32, %arg1: memref<1xf32, #tpu.memory_space<smem>>) -> (i32, i32) {
    %c0_i32 = arith.constant 0 : i32
    %c0_i32_0 = arith.constant 0 : i32
    return %arg0, %c0_i32 : i32, i32
  }
}

</mosaic_0001>

<bundles_post_ra>
// kernel: tpu_custom_call.1
= control target key start
LH: loop header
LB: loop body
LE: loop exit
PB: predicated region body
PF: predicated region fallthrough
CT: control target
= control target key end

     0   :  { %8 = vsyncpa [#allocation5], 0  ;;  %s133_s0 = inlined_call_operand.<no memory space> [shape: f32[1], index: 0, kind: input, shape index: {}]   ;;  %s134_s1 = inlined_call_operand.hbm [shape: f32[1,512], index: 1, kind: input, shape index: {}]   ;;  %s135_s2 = inlined_call_operand.hbm [shape: f32[1,512], index: 2, kind: output, shape index: {}]  }
   0x1   :  { %9 = vsyncpa [#allocation6], 0  ;;  %s15_s11 = sshll.u32 %s134_s1, 4  ;;  %s107_s12 = smov [#allocation4]   ;;  %s16_s11 = int_to_ptr.hbm [resolvable:$true] %s15_s11 }
   0x2   :  { %s17_s13 = sshll.u32 %s107_s12, 4  ;;  %s18_s13 = int_to_ptr.vmem [resolvable:$true] %s17_s13 }
   0x3   :  { %20 = dma.hbm_to_vmem [thread:$0]  %s16_s11, 64, %s18_s13, [#allocation5]  }
   0x4   :  { %103 = dma.done.wait [#allocation5], 64  }
   0x5   :  { %104 = vsyncadd [#allocation5], 4294967232  ;;  %v27_v0 = vstv %s133_s0  ;;  %v25_v1 = vld [vmem:[#allocation4] sm:$0xf]  ;;  %v31_v2 = vlaneseq  ;;  %s108_s16 = smov [#allocation7]   ;;  %s43_s1 = sshll.u32 %s135_s2, 4  ;;  %s44_s1 = int_to_ptr.hbm [resolvable:$true] %s43_s1 }
   0x6   :  { %v28_v3 = vmul.f32 %v27_v0, %v25_v1  ;;  %s41_s17 = sshll.u32 %s108_s16, 4  ;;  %s42_s17 = int_to_ptr.vmem [resolvable:$true] %s41_s17 }
   0x7   :  { %vm33_vm0 = vcmp.lt.s32.totalorder %v31_v2, 512 }
   0x8   :  { %v29_v4 = vmax.f32 %v28_v3, 0.0 }
   0xa   :  { %v30_v5 = vmin.f32 %v29_v4, 1.0 }
   0xc   :  { %35 = vst.msk [vmem:[#allocation7] sm:$0xf] %vm33_vm0, %v30_v5 }
   0xd   :  { %46 = dma.vmem_to_hbm [thread:$0]  %s42_s17, 64, %s44_s1, [#allocation6]  }
   0xe   :  { %105 = dma.done.wait [#allocation6], 64  }
   0xf   :  { %106 = vsyncadd [#allocation6], 4294967232 }
  0x10   :  { %51 = vsyncpa [#allocation5], 1 }
  0x11   :  { %52 = vsyncpa [#allocation6], 1 }

</bundles_post_ra>
